<compile_context>
chip_gen: v5e
topology: v5e:2x2
jax: 0.10.0
libtpu: 0.0.40
codegen_flags: <defaults>
</compile_context>

<pallas_src>
import jax
import jax.numpy as jnp
import numpy as np
from jax.experimental import pallas as pl
from jax.experimental.pallas import tpu as pltpu


def rel_conv_kernel(alpha_ref,           # scalar prefetch (SMEM), shape (1,) f32
                    code_ref,            # (tk, tm)        int8 edge codes (transposed)
                    feat_ref,            # (F_IN, tk)      bf16 source features (transposed)
                    invdeg_ref,          # (1, tm)         f32 1/in-degree (lane-dense row)
                    hsb_ref,             # (D_SELF+1, tm)  f32 [h_self^T ; ones] (bias hook)
                    wsb_ref,             # (D_PAD, D_SELF+1) f32 [w_self^T | b_self+b_neigh]
                    wn_ref,              # (D_PAD, F_IN)   f32 w_neigh^T
                    out_ref,             # (D_PAD, tm)     out_dtype
                    acc_ref):            # (F_IN, tm)      f32 scratch accumulator
    k = pl.program_id(1)

    @pl.when(k == 0)
    def _init():
        acc_ref[...] = jnp.zeros_like(acc_ref)

    # bf16 decode (v6e/v7x have bf16 VALU; exact for codes {0,±1,2}):
    #   0 -> 0 (no edge), ±1 -> ±alpha, 2 -> 1 (direction==0 edge).
    # Assumes alpha != 0 (see header).
    alpha_bf = alpha_ref[0].astype(jnp.bfloat16)
    codes = code_ref[...].astype(jnp.bfloat16)                      # (tk, tm)
    w = jnp.where(codes == 2, jnp.bfloat16(1.0), codes * alpha_bf)

    # Transposed streamed aggregation on the MXU: bf16 inputs, f32 accumulation.
    # N = tm (>=128) fills the MXU lanes; acc is lane-dense.
    acc_ref[...] += jnp.dot(feat_ref[...], w, preferred_element_type=jnp.float32)

    @pl.when(k == pl.num_programs(1) - 1)
    def _finalize():
        h_neigh = acc_ref[...] * invdeg_ref[...]                    # mean aggregation
        # fc_self + (pre-summed) bias, fused via the ones row in hsb.
        out = jnp.dot(wsb_ref[...], hsb_ref[...],
                      preferred_element_type=jnp.float32)
        out = out + jnp.dot(wn_ref[...], h_neigh,                   # fc_neigh
                            preferred_element_type=jnp.float32)
        out_ref[...] = out.astype(out_ref.dtype)


def _round_up(x, m):
    return (x + m - 1) // m * m


def _vmem_limit_bytes():
    """Per-generation VMEM budget: ~75% of physical, capped at 100 MiB.
       v5e/v6e (128 MiB) -> 96 MiB; v7x (64 MiB / TC) -> 48 MiB; fallback 48 MiB."""
    cap = None
    try:
        info = pltpu.get_tpu_info()
        for name in ("vmem_capacity_bytes", "vmem_size_bytes", "vmem_bytes"):
            v = getattr(info, name, None)
            if v:
                cap = int(v)
                break
    except Exception:
        cap = None
    if not cap:
        cap = 64 * 1024 * 1024          # conservative (v7x per-TC) fallback
    return min(cap * 3 // 4, 100 * 1024 * 1024)


def encode_edges(adj, direction):
    """adj/direction: [N_dst, N_src]. Returns TRANSPOSED int8 codes [N_src, N_dst]:
       0 = no edge, ±1 = edge with direction ±1, 2 = edge with direction 0.
       (One int8 per edge => 8x less HBM edge traffic than two f32 arrays;
        transpose done once at graph-build time, not per forward.)"""
    d = jnp.round(direction).astype(jnp.int8)
    code = jnp.where(adj != 0,
                     jnp.where(d == 0, jnp.int8(2), d),
                     jnp.int8(0)).astype(jnp.int8)
    return code.T


def my_rel_conv(edge_code_t, alpha, feat, h_self,
                w_self, b_self, w_neigh, b_neigh,
                *, tm=512, tk=2048, out_dtype=jnp.float32):
    """edge_code_t: [N_src, N_dst] int8 (see encode_edges); feat: [N_src, F_IN];
       h_self: [N_dst, D_SELF]; weights pre-transposed to [in, out].
       out_dtype=jnp.bfloat16 halves output writeback if the consumer tolerates it."""
    n_src, n_dst = edge_code_t.shape
    f_in = feat.shape[1]
    d_self = h_self.shape[1]
    d_out = w_self.shape[1]
    d_pad = _round_up(d_out, 8)          # output rows on the sublane axis; lanes = tm

    # Tile selection: tm and tk are lane dims (codes/out/acc and feat resp.) -> x128.
    tm = _round_up(min(tm, n_dst), 128)
    tk = _round_up(min(tk, n_src), 128)
    # v7x megacore: keep >= 2 tiles on the 'parallel' dst axis when the graph allows.
    if _round_up(n_dst, 128) >= 256:
        tm = min(tm, _round_up(-(-n_dst // 2), 128))
    n_dst_p = _round_up(n_dst, tm)
    n_src_p = _round_up(n_src, tk)

    # 1/in-degree is graph-static: precompute (no in-kernel cross-lane reduce/divide).
    deg = jnp.sum((edge_code_t != 0).astype(jnp.float32), axis=0, keepdims=True)  # (1, n_dst)
    inv_deg = jnp.where(deg > 0.0, 1.0 / deg, 0.0)

    code_p = jnp.pad(edge_code_t, ((0, n_src_p - n_src), (0, n_dst_p - n_dst)))
    feat_t = jnp.pad(feat.T.astype(jnp.bfloat16), ((0, 0), (0, n_src_p - n_src)))
    invdeg_p = jnp.pad(inv_deg, ((0, 0), (0, n_dst_p - n_dst)))
    # h_self^T with an appended row of ones; the ones row picks up the pre-summed
    # bias column folded into wsb, fusing the bias add into the self matmul.
    hsb = jnp.concatenate([h_self.T, jnp.ones((1, n_dst), jnp.float32)], axis=0)
    hsb_p = jnp.pad(hsb, ((0, 0), (0, n_dst_p - n_dst)))
    wsb = jnp.concatenate([w_self.T, (b_self + b_neigh).T], axis=1)     # (d_out, d_self+1)
    wsb_p = jnp.pad(wsb, ((0, d_pad - d_out), (0, 0)))
    wn_p = jnp.pad(w_neigh.T, ((0, d_pad - d_out), (0, 0)))             # (d_pad, f_in)

    grid = (n_dst_p // tm, n_src_p // tk)

    out_t = pl.pallas_call(
        rel_conv_kernel,
        out_shape=jax.ShapeDtypeStruct((d_pad, n_dst_p), out_dtype),
        grid_spec=pltpu.PrefetchScalarGridSpec(
            num_scalar_prefetch=1,                                   # alpha -> SMEM
            grid=grid,
            in_specs=[
                # TODO(synk): add pipeline_mode=pl.Buffered(3) here if xprof shows
                # exposed DMA waits on the int8 code stream (most likely on v5e).
                pl.BlockSpec((tk, tm), lambda i, k, a: (k, i)),              # edge codes
                pl.BlockSpec((f_in, tk), lambda i, k, a: (0, k)),            # feat^T (bf16)
                pl.BlockSpec((1, tm), lambda i, k, a: (0, i)),               # 1/deg row
                pl.BlockSpec((d_self + 1, tm), lambda i, k, a: (0, i)),      # [h_self^T; 1]
                pl.BlockSpec((d_pad, d_self + 1), lambda i, k, a: (0, 0)),   # [w_self^T | b]
                pl.BlockSpec((d_pad, f_in), lambda i, k, a: (0, 0)),         # w_neigh^T
            ],
            out_specs=pl.BlockSpec((d_pad, tm), lambda i, k, a: (0, i)),
            scratch_shapes=[pltpu.VMEM((f_in, tm), jnp.float32)],
        ),
        compiler_params=pltpu.CompilerParams(
            dimension_semantics=("parallel", "arbitrary"),   # dst tiles megacore-parallel
            vmem_limit_bytes=_vmem_limit_bytes(),
        ),
    )(alpha, code_p, feat_t, invdeg_p, hsb_p, wsb_p, wn_p)

    # One cheap wrapper-side transpose of the (d_out, n_dst) result.
    return out_t[:d_out, :n_dst].T


def reference(adj, direction, alpha, feat, h_self,
              w_self, b_self, w_neigh, b_neigh):
    """Pure-f32 reference reproducing the PyTorch module's default forward path."""
    a = direction * alpha[0]
    a = jnp.where(a == 0.0, 1.0, a)
    w = adj * a
    deg = jnp.sum(adj, axis=1, keepdims=True)
    inv = jnp.where(deg > 0.0, 1.0 / deg, 0.0)
    h_neigh = (w @ feat) * inv
    return h_self @ w_self + b_self + h_neigh @ w_neigh + b_neigh


if __name__ == "__main__":
    # Small synthetic problem sizes; tm=128/tk=256 chosen so the demo exercises a
    # multi-tile grid (2 dst tiles x 2 src reduction tiles). Real graphs should
    # use the much larger defaults (tm=512, tk=2048).
    N_SRC, N_DST = 512, 256
    F_IN = 32          # in_feats (source feature dim)
    D_SELF = 9         # dst 'ntype' feature dim (= assumed get_options().in_dim)
    D_OUT = 32         # out_feats

    key = jax.random.PRNGKey(0)
    k_feat, k_self, k_adj, k_dir, k_ws, k_bs, k_wn, k_bn = jax.random.split(key, 8)

    feat = jax.random.normal(k_feat, (N_SRC, F_IN), dtype=jnp.float32)
    h_self = jax.random.normal(k_self, (N_DST, D_SELF), dtype=jnp.float32)

    # Dense graph: ~50% edge density; direction in {-1, 0, 1}.
    adj = (jax.random.uniform(k_adj, (N_DST, N_SRC)) < 0.5).astype(jnp.float32)
    direction = jax.random.randint(k_dir, (N_DST, N_SRC), -1, 2).astype(jnp.float32)

    def xavier(k, shape):
        fan_in, fan_out = shape
        lim = np.sqrt(6.0 / (fan_in + fan_out)) * np.sqrt(2.0)  # gain('relu')
        return jax.random.uniform(k, shape, jnp.float32, -lim, lim)

    w_self = xavier(k_ws, (D_SELF, D_OUT))               # pre-transposed [in, out]
    b_self = jax.random.normal(k_bs, (1, D_OUT), dtype=jnp.float32) * 0.01
    w_neigh = xavier(k_wn, (F_IN, D_OUT))
    b_neigh = jax.random.normal(k_bn, (1, D_OUT), dtype=jnp.float32) * 0.01
    # Learnable scalar (module inits it to 1.0); 0.75 is bf16-exact and exercises
    # the alpha multiply in the decode.
    alpha = jnp.full((1,), 0.75, dtype=jnp.float32)

    # Graph shipped to the kernel as one TRANSPOSED int8 code per edge.
    edge_code_t = encode_edges(adj, direction)

    out = my_rel_conv(edge_code_t, alpha, feat, h_self,
                      w_self, b_self, w_neigh, b_neigh, tm=128, tk=256)
    out = jax.block_until_ready(out)

    ref = reference(adj, direction, alpha, feat, h_self,
                    w_self, b_self, w_neigh, b_neigh)
    # Tolerance accounts for the bf16 aggregation matmul (f32 accumulation).
    np.testing.assert_allclose(np.asarray(out), np.asarray(ref),
                               rtol=2e-2, atol=2e-2)
    print("KERNEL_OK")
</pallas_src>

<mosaic_0001>
module attributes {stable_mosaic.version = 11 : i64} {
  func.func @rel_conv_kernel(%arg0: i32, %arg1: i32, %arg2: memref<1xf32, #tpu.memory_space<smem>>, %arg3: memref<256x128xi8, #tpu.memory_space<vmem>>, %arg4: memref<32x256xbf16, #tpu.memory_space<vmem>>, %arg5: memref<1x128xf32, #tpu.memory_space<vmem>>, %arg6: memref<10x128xf32, #tpu.memory_space<vmem>>, %arg7: memref<32x10xf32, #tpu.memory_space<vmem>>, %arg8: memref<32x32xf32, #tpu.memory_space<vmem>>, %arg9: memref<32x128xf32, #tpu.memory_space<vmem>>, %arg10: memref<32x128xf32, #tpu.memory_space<vmem>>) attributes {dimension_semantics = [#tpu.dimension_semantics<parallel>, #tpu.dimension_semantics<arbitrary>], iteration_bounds = array<i64: 2, 2>, scalar_prefetch = 1 : i64, scratch_operands = 1 : i64, tpu.core_type = #tpu.core_type<tc>, window_params = [{transform_indices = @transform_0, window_bounds = array<i64: 256, 128>}, {transform_indices = @transform_1, window_bounds = array<i64: 32, 256>}, {transform_indices = @transform_2, window_bounds = array<i64: 1, 128>}, {transform_indices = @transform_3, window_bounds = array<i64: 10, 128>}, {pipeline_mode = #tpu.pipeline_mode<synchronous>, transform_indices = @transform_4, window_bounds = array<i64: 32, 10>}, {pipeline_mode = #tpu.pipeline_mode<synchronous>, transform_indices = @transform_5, window_bounds = array<i64: 32, 32>}, {transform_indices = @transform_6, window_bounds = array<i64: 32, 128>}]} {
    %c0_i32 = arith.constant 0 : i32
    %0 = arith.cmpi eq, %arg1, %c0_i32 : i32
    %1 = arith.extui %0 : i1 to i32
    %c0_i32_0 = arith.constant 0 : i32
    %2 = arith.cmpi ne, %1, %c0_i32_0 : i32
    scf.if %2 {
      %cst_12 = arith.constant 0.000000e+00 : f32
      %21 = vector.broadcast %cst_12 : f32 to vector<32x128xf32>
      %c0_13 = arith.constant 0 : index
      %c0_14 = arith.constant 0 : index
      %22 = vector.load %arg10[%c0_13, %c0_14] : memref<32x128xf32, #tpu.memory_space<vmem>>, vector<32x128xf32>
      tpu.vector_store %arg10[%c0_13, %c0_14], %21 {strides = array<i32>} : memref<32x128xf32, #tpu.memory_space<vmem>>, vector<32x128xf32>,
    } else {
    }
    %c0 = arith.constant 0 : index
    %3 = memref.load %arg2[%c0] : memref<1xf32, #tpu.memory_space<smem>>
    %4 = arith.truncf %3 : f32 to bf16
    %c0_1 = arith.constant 0 : index
    %c0_2 = arith.constant 0 : index
    %5 = vector.load %arg3[%c0_1, %c0_2] : memref<256x128xi8, #tpu.memory_space<vmem>>, vector<256x128xi8>
    %6 = arith.sitofp %5 : vector<256x128xi8> to vector<256x128xbf16>
    %cst = arith.constant 2.000000e+00 : bf16
    %7 = vector.broadcast %cst : bf16 to vector<256x128xbf16>
    %8 = arith.cmpf oeq, %6, %7 : vector<256x128xbf16>
    %9 = vector.broadcast %4 : bf16 to vector<256x128xbf16>
    %10 = arith.mulf %6, %9 : vector<256x128xbf16>
    %cst_3 = arith.constant 1.000000e+00 : bf16
    %11 = vector.broadcast %cst_3 : bf16 to vector<256x128xbf16>
    %12 = arith.select %8, %11, %10 : vector<256x128xi1>, vector<256x128xbf16>
    %c0_4 = arith.constant 0 : index
    %c0_5 = arith.constant 0 : index
    %13 = vector.load %arg10[%c0_4, %c0_5] : memref<32x128xf32, #tpu.memory_space<vmem>>, vector<32x128xf32>
    %c0_6 = arith.constant 0 : index
    %c0_7 = arith.constant 0 : index
    %14 = vector.load %arg4[%c0_6, %c0_7] : memref<32x256xbf16, #tpu.memory_space<vmem>>, vector<32x256xbf16>
    %cst_8 = arith.constant dense<0.000000e+00> : vector<32x128xf32>
    %15 = tpu.matmul %14, %12, %cst_8 {dimension_numbers = #tpu.dot_dimension_numbers<[1], [0], [0], [1], [0, 0, 1, 1], [], []>} : vector<32x256xbf16>, vector<256x128xbf16>, vector<32x128xf32> -> vector<32x128xf32>
    %16 = arith.addf %13, %15 : vector<32x128xf32>
    %c0_9 = arith.constant 0 : index
    %c0_10 = arith.constant 0 : index
    %17 = vector.load %arg10[%c0_9, %c0_10] : memref<32x128xf32, #tpu.memory_space<vmem>>, vector<32x128xf32>
    tpu.vector_store %arg10[%c0_9, %c0_10], %16 {strides = array<i32>} : memref<32x128xf32, #tpu.memory_space<vmem>>, vector<32x128xf32>,
    %c1_i32 = arith.constant 1 : i32
    %18 = arith.cmpi eq, %arg1, %c1_i32 : i32
    %19 = arith.extui %18 : i1 to i32
    %c0_i32_11 = arith.constant 0 : i32
    %20 = arith.cmpi ne, %19, %c0_i32_11 : i32
    scf.if %20 {
      %c0_12 = arith.constant 0 : index
      %c0_13 = arith.constant 0 : index
      %21 = vector.load %arg10[%c0_12, %c0_13] : memref<32x128xf32, #tpu.memory_space<vmem>>, vector<32x128xf32>
      %c0_14 = arith.constant 0 : index
      %c0_15 = arith.constant 0 : index
      %22 = vector.load %arg5[%c0_14, %c0_15] : memref<1x128xf32, #tpu.memory_space<vmem>>, vector<1x128xf32>
      %23 = vector.broadcast %22 : vector<1x128xf32> to vector<32x128xf32>
      %24 = arith.mulf %21, %23 : vector<32x128xf32>
      %c0_16 = arith.constant 0 : index
      %c0_17 = arith.constant 0 : index
      %25 = vector.load %arg7[%c0_16, %c0_17] : memref<32x10xf32, #tpu.memory_space<vmem>>, vector<32x10xf32>
      %c0_18 = arith.constant 0 : index
      %c0_19 = arith.constant 0 : index
      %26 = vector.load %arg6[%c0_18, %c0_19] : memref<10x128xf32, #tpu.memory_space<vmem>>, vector<10x128xf32>
      %cst_20 = arith.constant dense<0.000000e+00> : vector<32x128xf32>
      %27 = tpu.matmul %25, %26, %cst_20 {dimension_numbers = #tpu.dot_dimension_numbers<[1], [0], [0], [1], [0, 0, 1, 1], [], []>} : vector<32x10xf32>, vector<10x128xf32>, vector<32x128xf32> -> vector<32x128xf32>
      %c0_21 = arith.constant 0 : index
      %c0_22 = arith.constant 0 : index
      %28 = vector.load %arg8[%c0_21, %c0_22] : memref<32x32xf32, #tpu.memory_space<vmem>>, vector<32x32xf32>
      %cst_23 = arith.constant dense<0.000000e+00> : vector<32x128xf32>
      %29 = tpu.matmul %28, %24, %cst_23 {dimension_numbers = #tpu.dot_dimension_numbers<[1], [0], [0], [1], [0, 0, 1, 1], [], []>} : vector<32x32xf32>, vector<32x128xf32>, vector<32x128xf32> -> vector<32x128xf32>
      %30 = arith.addf %27, %29 : vector<32x128xf32>
      %c0_24 = arith.constant 0 : index
      %c0_25 = arith.constant 0 : index
      %31 = vector.load %arg9[%c0_24, %c0_25] : memref<32x128xf32, #tpu.memory_space<vmem>>, vector<32x128xf32>
      tpu.vector_store %arg9[%c0_24, %c0_25], %30 {strides = array<i32>} : memref<32x128xf32, #tpu.memory_space<vmem>>, vector<32x128xf32>,
    } else {
    }
    return
  }
  func.func @transform_0(%arg0: i32, %arg1: i32, %arg2: memref<1xf32, #tpu.memory_space<smem>>) -> (i32, i32) {
    %c0_i32 = arith.constant 0 : i32
    return %arg1, %arg0 : i32, i32
  }
  func.func @transform_1(%arg0: i32, %arg1: i32, %arg2: memref<1xf32, #tpu.memory_space<smem>>) -> (i32, i32) {
    %c0_i32 = arith.constant 0 : i32
    %c0_i32_0 = arith.constant 0 : i32
    return %c0_i32, %arg1 : i32, i32
  }
  func.func @transform_2(%arg0: i32, %arg1: i32, %arg2: memref<1xf32, #tpu.memory_space<smem>>) -> (i32, i32) {
    %c0_i32 = arith.constant 0 : i32
    %c0_i32_0 = arith.constant 0 : i32
    return %c0_i32, %arg0 : i32, i32
  }
  func.func @transform_3(%arg0: i32, %arg1: i32, %arg2: memref<1xf32, #tpu.memory_space<smem>>) -> (i32, i32) {
    %c0_i32 = arith.constant 0 : i32
    %c0_i32_0 = arith.constant 0 : i32
    return %c0_i32, %arg0 : i32, i32
  }
  func.func @transform_4(%arg0: i32, %arg1: i32, %arg2: memref<1xf32, #tpu.memory_space<smem>>) -> (i32, i32) {
    %c0_i32 = arith.constant 0 : i32
    %c0_i32_0 = arith.constant 0 : i32
    %c0_i32_1 = arith.constant 0 : i32
    return %c0_i32, %c0_i32_0 : i32, i32
  }
  func.func @transform_5(%arg0: i32, %arg1: i32, %arg2: memref<1xf32, #tpu.memory_space<smem>>) -> (i32, i32) {
    %c0_i32 = arith.constant 0 : i32
    %c0_i32_0 = arith.constant 0 : i32
    %c0_i32_1 = arith.constant 0 : i32
    return %c0_i32, %c0_i32_0 : i32, i32
  }
  func.func @transform_6(%arg0: i32, %arg1: i32, %arg2: memref<1xf32, #tpu.memory_space<smem>>) -> (i32, i32) {
    %c0_i32 = arith.constant 0 : i32
    %c0_i32_0 = arith.constant 0 : i32
    return %c0_i32, %arg0 : i32, i32
  }
}

</mosaic_0001>

<bundles_post_ra>
// kernel: tpu_custom_call.1
= control target key start
LH: loop header
LB: loop body
LE: loop exit
PB: predicated region body
PF: predicated region fallthrough
CT: control target
= control target key end

     0   :  { %s2241_s0 = inlined_call_operand.<no memory space> [shape: f32[1], index: 0, kind: input, shape index: {}]   ;;  %s2242_s1 = inlined_call_operand.hbm [shape: s8[512,256], index: 1, kind: input, shape index: {}]   ;;  %s2243_s2 = inlined_call_operand.hbm [shape: bf16[32,512], index: 2, kind: input, shape index: {}]   ;;  %s2244_s3 = inlined_call_operand.vmem [shape: f32[1,256], index: 3, kind: input, shape index: {}]   ;;  %s2245_s4 = inlined_call_operand.vmem [shape: f32[10,256], index: 4, kind: input, shape index: {}]   ;;  %s2246_s5 = inlined_call_operand.vmem [shape: f32[32,10], index: 5, kind: input, shape index: {}]   ;;  %s2247_s6 = inlined_call_operand.hbm [shape: f32[32,32], index: 6, kind: input, shape index: {}]   ;;  %s2248_s7 = inlined_call_operand.hbm [shape: f32[32,256], index: 7, kind: output, shape index: {}]  }
   0x1   :  { %2268 = sst [smem:[#allocation33_spill]] %s2244_s3 }
   0x2   :  { %2269 = sst [smem:[#allocation34_spill]] %s2246_s5 }
   0x3   :  { %2270 = sst [smem:[#allocation35_spill]] %s2247_s6 }
   0x4   :  { %2271 = sst [smem:[#allocation36_spill]] %s2248_s7 }
   0x5   :  { %12 = sst [smem:[#allocation4]] %s2241_s0 }
   0x6   :  { %13 = vsyncpa [#allocation6], 0 }
   0x7   :  { %15 = vsyncpa [#allocation6 + $0x1], 0 }
   0x8   :  { %16 = vsyncpa [#allocation9], 0 }
   0x9   :  { %18 = vsyncpa [#allocation9 + $0x1], 0 }
   0xa   :  { %19 = vsyncpa [#allocation7], 0 }
   0xb   :  { %21 = vsyncpa [#allocation7 + $0x1], 0  ;;  %s1710_s26 = smov 0   ;;  %s1712_s27 = smov 0  }
   0xc   :  { %s1714_s28 = smov 0   ;;  %s1716_s29 = smov 0  }
   0xd   :  { %s1718_s30 = smov 0   ;;  %s1720_s8 = smov 0  }
   0xe   :  { %s1722_s9 = smov 0   ;;  %s1724_s0 = smov 0  }
   0xf   :  { %s1726_s10 = smov 0   ;;  %s1728_s11 = smov 0  }
  0x10   :  { %s1730_s12 = smov 0   ;;  %s1732_s13 = smov 0  }
  0x11   :  { %s1734_s14 = smov 0   ;;  %s1736_s15 = smov 0  }
  0x12 LB: > { %2272 = sst [smem:[#allocation17_spill]] %s1603_s26  ;;  %s1779_s16 = sadd.s32 4294967295, %s1655_s15   ;;  %s1655_s15 = sphi %s1736_s15, %s27_s15   ;;  %s1651_s14 = sphi %s1734_s14, %s2360_s14   ;;  %s1647_s13 = sphi %s1732_s13, %s2359_s13   ;;  %s1643_s12 = sphi %s1730_s12, %s2358_s12   ;;  %s1639_s11 = sphi %s1728_s11, %s2357_s11   ;;  %s1635_s10 = sphi %s1726_s10, %s2348_s10   ;;  %s1631_s0 = sphi %s1724_s0, %s2356_s0   ;;  %s1627_s9 = sphi %s1722_s9, %s2355_s9   ;;  %s1623_s8 = sphi %s1720_s8, %s2354_s8   ;;  %s1619_s30 = sphi %s1718_s30, %s2353_s30   ;;  %s1615_s29 = sphi %s1716_s29, %s2345_s29   ;;  %s1611_s28 = sphi %s1714_s28, %s2352_s28   ;;  %s1607_s27 = sphi %s1712_s27, %s2351_s27   ;;  %s1603_s26 = sphi %s1710_s26, %s2343_s26  }
  0x13   : > { %2273 = sst [smem:[#allocation18_spill]] %s1607_s27  ;;  %s36_s18 = sadd.s32 1, %s1647_s13 }
  0x14   : > { %2274 = sst [smem:[#allocation19_spill]] %s1619_s30  ;;  %s39_s19 = sadd.s32 1, %s1651_s14 }
  0x15   : > { %2275 = sst [smem:[#allocation20_spill]] %s1635_s10  ;;  %p37_p0 = scmp.ge.s32.totalorder %s36_s18, 2 }
  0x16   : > { %2276 = sst [smem:[#allocation21_spill]] %s1639_s11  ;;  %s48_s20 = sadd.s32 1, %s1635_s10 }
  0x17   : > { %2277 = sst [smem:[#allocation22_spill]] %s1643_s12  ;;  %p55_p1 = scmp.ne.s32.totalorder %s1635_s10, %s1631_s0 }
  0x18   : > { %2278 = sst [smem:[#allocation23_spill]] %s1779_s16  ;;  %p56_p2 = scmp.eq.s32.totalorder %s1655_s15, 0 }
  0x19   : > { %s2362_s18 = smov (%p37_p0, %s36_s18), 0  ;;  %s2364_s19 = smov (!%p37_p0, %s39_s19), %s1651_s14 }
  0x1a   : > { %2279 = sst [smem:[#allocation24_spill]] %s2362_s18  ;;  %s43_s21 = ssub.s32 %s1647_s13, %s2362_s18 }
  0x1b   : > { %p1795_p3 = por %p56_p2, %p55_p1  ;;  %p41_p4 = scmp.ge.s32.totalorder %s2364_s19, 2 }
  0x1c   : > { %p61_p5 = scmp.ne.s32.totalorder %s1631_s0, %s1627_s9  ;;  %p2252_p6 = scmp.eq.s32.totalorder %s1779_s16, 0 }
  0x1d   : > { %p72_p7 = scmp.eq.s32.totalorder %s43_s21, 0  ;;  %s2366_s19 = smov (%p41_p4, %s2364_s19), 0 }
  0x1e   : > { %2281 = sst [smem:[#allocation25_spill]] %s2366_s19  ;;  %p1805_p8 = por %p2252_p6, %p61_p5 }
  0x1f   : > { %s74_s24 = sadd.s32 1, %s1623_s8  ;;  %s44_s25 = ssub.s32 %s1651_s14, %s2366_s19 }
  0x20   : > { %s2282_s23 = scalar_select %p1805_p8, 1, 0 }
  0x21   : > { %p81_p9 = scmp.ne.s32.totalorder %s1623_s8, %s1619_s30  ;;  %s45_s9 = sor.u32 %s44_s25, %s43_s21 }
  0x22   : > { %2283 = sst [smem:[#allocation26_spill]] %s2282_s23  ;;  %p87_p10 = scmp.ne.s32.totalorder %s1619_s30, %s1615_s29 }
  0x23   : > { %p46_p11 = scmp.eq.s32.totalorder %s45_s9, 0  ;;  %p1818_p12 = por %p81_p9, %p56_p2 }
  0x24   : > { %s1823_s18 = scalar_select %p72_p7, %s1623_s8, %s74_s24  }
  0x25   : > { %s1826_s7 = scalar_select %p46_p11, %s1635_s10, %s48_s20  }
  0x26   : > { %2285 = sst [smem:[#allocation27_spill]] %s1823_s18  ;;  %p1830_p13 = por %p87_p10, %p2252_p6 }
  0x27   : > { %2286 = sst [smem:[#allocation28_spill]] %s1826_s7  ;;  %p124_p0 = scmp.eq.s32.totalorder %s44_s25, 0 }
  0x28   : > { %s2287_s5 = scalar_select %p1830_p13, 1, 0 }
  0x29   : > { %s126_s21 = sadd.s32 1, %s1611_s28  ;;  %p133_p1 = scmp.ne.s32.totalorder %s1611_s28, %s1607_s27 }
  0x2a   : > { %2288 = sst [smem:[#allocation29_spill]] %s2287_s5  ;;  %p205_p5 = scmp.eq.s32.totalorder %s1779_s16, 3 }
  0x2b   : > { %s1838_s29 = scalar_select %p124_p0, %s1611_s28, %s126_s21  }
  0x2c   : > { %p1842_p4 = por %p133_p1, %p56_p2  ;;  %p210_p7 = scmp.ne.s32.totalorder %s1607_s27, %s1603_s26 }
  0x2d   : > { %2289 = sst [smem:[#allocation30_spill]] %s1838_s29  ;;  %s2291_s20 = sadd.s32 4294967294, %s1655_s15  }
  0x2e   : > { %p211_p9 = scmp.eq.s32.totalorder %s2291_s20, 3  ;;  %p1851_p11 = por %p205_p5, %p133_p1 }
  0x2f   : > { %p1194_p10 = scmp.ge.s32.totalorder %s1655_s15, 1  ;;  %p218_p0 = scmp.lt.s32.totalorder %s1655_s15, 5 }
  0x30   : > { %s2292_s24 = scalar_select %p1851_p11, 1, 0 }
  0x31   : > { %p1856_p6 = por %p211_p9, %p210_p7  ;;  %s2296_s6 = sld [smem:[#allocation35_spill]] }
  0x32   : > { %2293 = sst [smem:[#allocation31_spill]] %s2292_s24  ;;  %p1864_p2 = pnand %p1194_p10, %p218_p0 }
  0x33   : > { %s2294_s25 = scalar_select %p1856_p6, 1, 0 }
  0x34   : > { %p1281_p1 = pneg %p1864_p2  ;;  %s1657_s20 = smov [#allocation11]  }
  0x35   : > { %2295 = sst [smem:[#allocation32_spill]] %s2294_s25  ;;  %s234_s29 = sshll.u32 %s1657_s20, 4  ;;  %s235_s29 = int_to_ptr.vmem [resolvable:$true] %s234_s29 }
  0x36   : > { %p2298_p5 = scmp.eq.s32.totalorder %s1779_s16, 0  ;;  %s1658_s26 = smov 128  }
  0x37   : > { %s232_s7 = sshll.u32 %s2296_s6, 4  ;;  %s1659_s25 = smov 8   ;;  %s233_s7 = int_to_ptr.hbm [resolvable:$true] %s232_s7 }
  0x38   : > { %p1282_p7 = pnand %p1281_p1, %p2298_p5  ;;  %p1196_p9 = scmp.ge.s32.totalorder %s1655_s15, 4 }
  0x39   : > { %s248_s19 = sand.u32 (!%p1196_p9), 1, %s1635_s10   ;;  %s1243_s21 = sshll.u32 (!%p1196_p9), %s1647_s13, 4 }
  0x3a   : > { %1284 = dma.hbm_to_vmem [thread:$0]  (!%p1282_p7), %s233_s7, 512, %s235_s29, [#allocation9], %s1658_s26, %s1658_s26, %s1659_s25  }
  0x3b   : > { %244 = sbr.rel (%p1196_p9) target bundleno = 77 (0x4d), region = 24  ;;  %s1197_s6 = sshll.u32 (!%p1196_p9), %s248_s19, 6 }
  0x3c   : > { %s257_s24 = sadd.s32 (!%p1196_p9), %s1651_s14, %s1243_s21  ;;  %s252_s11 = scalar_lea.vmem (!%p1196_p9), [#allocation5], %s1197_s6 }
  0x3d   : > { %s1200_s20 = sshll.u32 (!%p1196_p9), %s257_s24, 3  ;;  %s262_s3 = sshll.u32 (!%p1196_p9), %s252_s11, 4  ;;  %s263_s3 = int_to_ptr.vmem [resolvable:$true] %s262_s3 }
  0x3e   : > { %s259_s7 = scalar_lea.hbm (!%p1196_p9), %s2242_s1, %s1200_s20  ;;  %s272_s29 = sand.u32 (!%p1196_p9), 1, %s1655_s15  }
  0x3f   : > { %s260_s26 = sshll.u32 (!%p1196_p9), %s259_s7, 4  ;;  %s249_s25 = scalar_lea.sflag (!%p1196_p9), [#allocation6], %s248_s19  ;;  %s261_s26 = int_to_ptr.hbm [resolvable:$true] %s260_s26 }
  0x40   : > { %s1660_s10 = smov 256   ;;  %s1661_s5 = smov 128  }
  0x41   : > { %s1662_s30 = smov 8   ;;  %s274_s21 = sand.u32 1, %s1623_s8  }
  0x42   : > { %1273 = dma.hbm_to_vmem [thread:$0]  (%p1795_p3), %s261_s26, 1024, %s263_s3, %s249_s25, %s1660_s10, %s1661_s5, %s1662_s30  }
  0x43   : > { %s1201_s16 = sshll.u32 %s274_s21, 5  ;;  %s1244_s24 = sshll.u32 %s1647_s13, 3 }
  0x44   : > { %s281_s23 = scalar_lea.hbm %s2243_s2, %s1244_s24  ;;  %s276_s12 = scalar_lea.vmem [#allocation8], %s1201_s16 }
  0x45   : > { %s282_s27 = sshll.u32 %s281_s23, 4  ;;  %s284_s20 = sshll.u32 %s276_s12, 4  ;;  %s283_s27 = int_to_ptr.hbm [resolvable:$true] %s282_s27  ;;  %s285_s20 = int_to_ptr.vmem [resolvable:$true] %s284_s20 }
  0x46   : > { %s273_s7 = scalar_lea.sflag [#allocation9], %s272_s29  ;;  %299 = sbr.rel (!%p1842_p4) target bundleno = 77 (0x4d), region = 40 }
  0x47   : > { %1274 = dma.hbm_to_vmem [thread:$0]  (%p1818_p12), %s283_s27, 512, %s285_s20, %s273_s7, %s1660_s10, %s1661_s5, %s1662_s30  }
  0x48   : > { %s301_s3 = sand.u32 (%p1842_p4), 1, %s1611_s28   ;;  %s1205_s22 = sshll.u32 (%p1842_p4), %s1651_s14, 3 }
  0x49   : > { %s1204_s19 = sshll.u32 (%p1842_p4), %s301_s3, 4  ;;  %s305_s21 = scalar_lea.vmem (%p1842_p4), %s2245_s4, %s1205_s22 }
  0x4a   : > { %v336_v0 = vld [vmem:[%s305_s21] sm:$0xff] (%p1842_p4)  ;;  %v338_v1 = vld [vmem:[%s305_s21 + $0x10] sm:$0xff] (%p1842_p4)  ;;  %s303_s16 = scalar_lea.vmem (%p1842_p4), [#allocation10], %s1204_s19 }
  0x4b   : > { %337 = vst [vmem:[%s303_s16] sm:$0xff] %v336_v0 }
  0x4c   : > { %339 = vst [vmem:[%s303_s16 + $0x8] sm:$0xff] %v338_v1 }
  0x4d PF: > { %348 = sbr.rel (%p1864_p2) target bundleno = 540 (0x21c), region = 78  ;;  %s350_s30 = sand.u32 (!%p1864_p2), 1, %s1631_s0  }
  0x4e   : > { %s1207_s10 = sshll.u32 (!%p1864_p2), %s350_s30, 6  ;;  %s351_s17 = scalar_lea.sflag (!%p1864_p2), [#allocation6], %s350_s30 }
  0x4f   : > { %s1899_s23 = scalar_lea.vmem (!%p1864_p2), [#allocation5], %s1207_s10 }
  0x52   : > { %1586 = dma.done.wait (%p1805_p8), %s351_s17, 1024  }
  0x53   : > { %1588 = vsyncadd (%p1805_p8), %s351_s17, 4294966272  ;;  %s2300_s9 = sld [smem:[#allocation23_spill]] }
  0x54   : > { %s2301_s29 = sld [smem:[#allocation19_spill]] }
  0x59   : > { %s360_s6 = sand.u32 1, %s2300_s9  }
  0x5a   : > { %s362_s11 = sand.u32 1, %s2301_s29   ;;  %s361_s18 = scalar_lea.sflag [#allocation9], %s360_s6 }
  0x5b   : > { %s1208_s27 = sshll.u32 %s362_s11, 5 }
  0x5c   : > { %s1907_s12 = scalar_lea.vmem [#allocation8], %s1208_s27 }
  0x5d   : > { %1590 = dma.done.wait (%p1830_p13), %s361_s18, 512  }
  0x5e   : > { %1592 = vsyncadd (%p1830_p13), %s361_s18, 4294966784  ;;  %s2303_s20 = sld [smem:[#allocation18_spill]]  ;;  %p2304_p3 = scmp.eq.s32.totalorder %s2300_s9, 0 }
  0x64   : > { %s1914_s7 = sand.u32 1, %s2303_s20  }
  0x65   : > { %s1209_s3 = sshll.u32 %s1914_s7, 4 }
  0x66   : > { %s1917_s22 = scalar_lea.vmem [#allocation10], %s1209_s3 }
  0x67   : > { %1594 = dma.done.wait (%p2304_p3), [#allocation9], 512   ;;  %p2305_p8 = pmov %p2304_p3 }
  0x68   : > { %s2306_s19 = sld [smem:[#allocation22_spill]]  ;;  %s1211_s26 = sshll.u32 %s1914_s7, 5 }
  0x69   : > { %1596 = vsyncadd (%p2305_p8), [#allocation9], 4294966784  ;;  %s2307_s16 = sld [smem:[#allocation33_spill]]  ;;  %s1932_s30 = scalar_lea.vmem [#allocation12], %s1211_s26 }
  0x6a   : > { %s2308_s10 = sld [smem:[#allocation21_spill]] }
  0x6e   : > { %p420_p12 = scmp.lt.s32.totalorder %s2306_s19, 1 }
  0x70   : > { %s2368_s19 = smov (!%p420_p12, %s2306_s19), 1  ;;  %p1212_p13 = scmp.ne.s32.totalorder %s2308_s10, 0 }
  0x71   : > { %s422_s5 = scalar_lea.vmem %s2307_s16, %s2368_s19 }
  0x72   : > { %427 = sbr.rel (%p1212_p13) target bundleno = 124 (0x7c), region = 98 }
  0x77   : > { %v1663_v2 = vmov 0.0  }
  0x78   : > { %428 = vst [vmem:[#allocation2 + $0x10] sm:$0xff] %v1663_v2 }
  0x79   : > { %429 = vst [vmem:[#allocation2] sm:$0xff] %v1663_v2 }
  0x7a   : > { %430 = vst [vmem:[#allocation2 + $0x18] sm:$0xff] %v1663_v2 }
  0x7b   : > { %431 = vst [vmem:[#allocation2 + $0x8] sm:$0xff] %v1663_v2 }
  0x7c PF: > { %s1935_s17 = sld [smem:[#allocation4]]  ;;  %v446_v3 = vld [vmem:[%s1899_s23 + $0x18] sm:$0xff]  ;;  %v445_v35 = vld [vmem:[%s1899_s23 + $0x10] sm:$0xff] }
  0x7d   : > { %v450_v4 = vld [vmem:[%s1899_s23 + $0x38] sm:$0xff]  ;;  %v465_v5 = vunpack.c.2.s8 %v446_v3  ;;  %v466_v6 = vunpack.c.3.s8 %v446_v3  ;;  %v463_v9 = vunpack.c.0.s8 %v446_v3  ;;  %v464_v10 = vunpack.c.1.s8 %v446_v3  ;;  %v449_v36 = vld [vmem:[%s1899_s23 + $0x30] sm:$0xff] }
  0x7e   : > { %v481_v7 = vunpack.c.2.s8 %v450_v4  ;;  %v482_v8 = vunpack.c.3.s8 %v450_v4  ;;  %v479_v11 = vunpack.c.0.s8 %v450_v4  ;;  %v480_v12 = vunpack.c.1.s8 %v450_v4 }
  0x7f   : > { %v497_v13 = vcvt.s32.f32 %v465_v5  ;;  %v498_v14 = vcvt.s32.f32 %v466_v6  ;;  %v495_v17 = vcvt.s32.f32 %v463_v9  ;;  %v496_v18 = vcvt.s32.f32 %v464_v10 }
  0x80   : > { %v513_v15 = vcvt.s32.f32 %v481_v7  ;;  %v514_v16 = vcvt.s32.f32 %v482_v8  ;;  %v511_v19 = vcvt.s32.f32 %v479_v11  ;;  %v512_v20 = vcvt.s32.f32 %v480_v12 }
  0x81   : > { %v529_v21 = vpack.c.bf16 %v497_v13, %v497_v13  ;;  %v530_v22 = vpack.c.bf16 %v498_v14, %v498_v14  ;;  %v527_v25 = vpack.c.bf16 %v495_v17, %v495_v17  ;;  %v528_v26 = vpack.c.bf16 %v496_v18, %v496_v18  ;;  %v2087_v17 = vld [vmem:[%s1899_s23 + $0x28] sm:$0xff] }
  0x82   : > { %v545_v23 = vpack.c.bf16 %v513_v15, %v513_v15  ;;  %v546_v24 = vpack.c.bf16 %v514_v16, %v514_v16  ;;  %s435_s9 = sshrl.u32 %s1935_s17, 16  ;;  %v543_v27 = vpack.c.bf16 %v511_v19, %v511_v19  ;;  %v544_v28 = vpack.c.bf16 %v512_v20, %v512_v20  ;;  %p434_p4 = scmp.ne.f32.partialorder %s1935_s17, %s1935_s17 }
  0x83   : > { %s436_s29 = sand.u32 1, %s435_s9  ;;  %v561_v29 = vunpack.c.l.bf16 %v529_v21  ;;  %v562_v30 = vunpack.c.l.bf16 %v530_v22  ;;  %v559_v33 = vunpack.c.l.bf16 %v527_v25  ;;  %v1942_v34 = vunpack.c.l.bf16 %v528_v26 }
  0x84   : > { %s437_s24 = sadd.s32 32767, %s436_s29  ;;  %v577_v31 = vunpack.c.l.bf16 %v545_v23  ;;  %v578_v32 = vunpack.c.l.bf16 %v546_v24  ;;  %v1947_v37 = vunpack.c.l.bf16 %v543_v27  ;;  %v1949_v38 = vunpack.c.l.bf16 %v544_v28 }
  0x85   : > { %s438_s6 = sadd.s32 %s437_s24, %s1935_s17  ;;  %vm593_vm0 = vcmp.eq.f32.partialorder %v561_v29, 2.0  ;;  %vm594_vm1 = vcmp.eq.f32.partialorder %v562_v30, 2.0  ;;  %vm591_vm4 = vcmp.eq.f32.partialorder %v559_v33, 2.0  ;;  %vm592_vm5 = vcmp.eq.f32.partialorder %v1942_v34, 2.0 }
  0x86   : > { %s439_s11 = sand.u32 4294901760, %s438_s6  ;;  %vm609_vm2 = vcmp.eq.f32.partialorder %v577_v31, 2.0  ;;  %vm610_vm3 = vcmp.eq.f32.partialorder %v578_v32, 2.0  ;;  %vm607_vm6 = vcmp.eq.f32.partialorder %v1947_v37, 2.0  ;;  %v461_v39 = vunpack.c.2.s8 %v445_v35  ;;  %vm1963_vm8 = vmpackc.low %vm593_vm0, %vm593_vm0 }
  0x87   : > { %s2370_s11 = smov (%p434_p4, %s439_s11), 2143289344  ;;  %v462_v40 = vunpack.c.3.s8 %v445_v35  ;;  %v477_v41 = vunpack.c.2.s8 %v449_v36  ;;  %v478_v42 = vunpack.c.3.s8 %v449_v36  ;;  %vm608_vm7 = vcmp.eq.f32.partialorder %v1949_v38, 2.0  ;;  %vm1973_vm9 = vmpackc.low %vm594_vm1, %vm594_vm1 }
  0x88   : > { %v459_v43 = vunpack.c.0.s8 %v445_v35  ;;  %v460_v44 = vunpack.c.1.s8 %v445_v35  ;;  %v475_v45 = vunpack.c.0.s8 %v449_v36  ;;  %v476_v46 = vunpack.c.1.s8 %v449_v36  ;;  %s442_s27 = sshrl.u32 %s2370_s11, 16  ;;  %vm1981_vm10 = vmpackc.low %vm609_vm2, %vm609_vm2 }
  0x89   : > { %v493_v47 = vcvt.s32.f32 %v461_v39  ;;  %v494_v48 = vcvt.s32.f32 %v462_v40  ;;  %v509_v49 = vcvt.s32.f32 %v477_v41  ;;  %v510_v50 = vcvt.s32.f32 %v478_v42  ;;  %s611_s18 = sshll.u32 %s442_s27, 16  ;;  %vm1999_vm11 = vmpackc.low %vm610_vm3, %vm610_vm3 }
  0x8a   : > { %v491_v51 = vcvt.s32.f32 %v459_v43  ;;  %v492_v52 = vcvt.s32.f32 %v460_v44  ;;  %v1957_v53 = vcvt.s32.f32 %v475_v45  ;;  %v1959_v54 = vcvt.s32.f32 %v476_v46  ;;  %s612_s20 = sor.u32 %s611_s18, %s442_s27  ;;  %vm2008_vm12 = vmpackc.low %vm591_vm4, %vm591_vm4 }
  0x8b   : > { %v525_v55 = vpack.c.bf16 %v493_v47, %v493_v47  ;;  %v526_v56 = vpack.c.bf16 %v494_v48, %v494_v48  ;;  %v541_v57 = vpack.c.bf16 %v509_v49, %v509_v49  ;;  %v542_v58 = vpack.c.bf16 %v510_v50, %v510_v50  ;;  %vm2019_vm13 = vmpackc.low %vm592_vm5, %vm592_vm5 }
  0x8c   : > { %v613_v59 = vstv %s612_s20  ;;  %v523_v61 = vpack.c.bf16 %v491_v51, %v491_v51  ;;  %v524_v62 = vpack.c.bf16 %v492_v52, %v492_v52  ;;  %v539_v63 = vpack.c.bf16 %v1957_v53, %v1957_v53  ;;  %vm708_vm14 = vmpackc.low %vm607_vm6, %vm607_vm6  ;;  %v444_v53 = vld [vmem:[%s1899_s23 + $0x8] sm:$0xff] }
  0x8d   : > { %v1969_v0 = vunpack.c.l.bf16 %v613_v59  ;;  %v557_v2 = vunpack.c.l.bf16 %v525_v55  ;;  %v558_v3 = vunpack.c.l.bf16 %v526_v56  ;;  %v1977_v4 = vunpack.c.l.bf16 %v541_v57  ;;  %vm709_vm15 = vmpackc.low %vm608_vm7, %vm608_vm7 }
  0x8e   : > { %v1985_v6 = vunpack.c.l.bf16 %v542_v58  ;;  %v1987_v7 = vunpack.c.l.bf16 %v523_v61  ;;  %v1989_v8 = vunpack.c.l.bf16 %v524_v62  ;;  %v540_v9 = vpack.c.bf16 %v1959_v54, %v1959_v54 }
  0x8f   : > { %v630_v10 = vmul.f32 %v1969_v0, %v561_v29  ;;  %v631_v11 = vmul.f32 %v1969_v0, %v562_v30  ;;  %v646_v12 = vmul.f32 %v1969_v0, %v577_v31  ;;  %v647_v13 = vmul.f32 %v1969_v0, %v578_v32 }
  0x90   : > { %v628_v15 = vmul.f32 %v1969_v0, %v559_v33  ;;  %v629_v16 = vmul.f32 %v1969_v0, %v1942_v34  ;;  %v644_v18 = vmul.f32 %v1969_v0, %v1947_v37  ;;  %v645_v19 = vmul.f32 %v1969_v0, %v1949_v38 }
  0x91   : > { %v662_v20 = vpack.c.bf16 %v630_v10, %v630_v10  ;;  %v663_v21 = vpack.c.bf16 %v631_v11, %v631_v11  ;;  %v678_v22 = vpack.c.bf16 %v646_v12, %v646_v12  ;;  %v679_v23 = vpack.c.bf16 %v647_v13, %v647_v13 }
  0x92   : > { %v660_v25 = vpack.c.bf16 %v628_v15, %v628_v15  ;;  %v661_v26 = vpack.c.bf16 %v629_v16, %v629_v16  ;;  %v676_v27 = vpack.c.bf16 %v644_v18, %v644_v18  ;;  %v677_v28 = vpack.c.bf16 %v645_v19, %v645_v19 }
  0x93   : > { %v726_v29 = vsel %vm1963_vm8, 1065369472, %v662_v20  ;;  %v727_v30 = vsel %vm1973_vm9, 1065369472, %v663_v21  ;;  %v742_v31 = vsel %vm1981_vm10, 1065369472, %v678_v22  ;;  %v626_v32 = vmul.f32 %v1969_v0, %v557_v2 }
  0x94   : > { %v818_v33 = vunpack.c.l.b16 %v726_v29  ;;  %v819_v34 = vunpack.c.l.b16 %v727_v30  ;;  %v743_v35 = vsel %vm1999_vm11, 1065369472, %v679_v23  ;;  %v834_v36 = vunpack.c.l.b16 %v742_v31 }
  0x95   : > { %v835_v37 = vunpack.c.l.b16 %v743_v35  ;;  %v724_v39 = vsel %vm2008_vm12, 1065369472, %v660_v25  ;;  %v725_v40 = vsel %vm2019_vm13, 1065369472, %v661_v26  ;;  %v740_v41 = vsel %vm708_vm14, 1065369472, %v676_v27 }
  0x96   : > { %v843_v42 = vpack.c.b16 %v819_v34, %v818_v33  ;;  %v816_v38 = vunpack.c.l.b16 %v724_v39  ;;  %v817_v43 = vunpack.c.l.b16 %v725_v40  ;;  %v741_v44 = vsel %vm709_vm15, 1065369472, %v677_v28 }
  0x97   : > { %v851_v45 = vpack.c.b16 %v835_v37, %v834_v36  ;;  %v832_v46 = vunpack.c.l.b16 %v740_v41  ;;  %v833_v47 = vunpack.c.l.b16 %v741_v44  ;;  %vm589_vm0 = vcmp.eq.f32.partialorder %v557_v2, 2.0 }
  0x98   : > { %868 = vmatpush.bf16.msra.mxu0 %v843_v42  ;;  %1249 = vmatpush.bf16.msra.mxu2 %v843_v42  ;;  %v842_v48 = vpack.c.b16 %v817_v43, %v816_v38  ;;  %vm590_vm1 = vcmp.eq.f32.partialorder %v558_v3, 2.0  ;;  %v627_v49 = vmul.f32 %v1969_v0, %v558_v3  ;;  %v658_v50 = vpack.c.bf16 %v626_v32, %v626_v32  ;;  %vm690_vm2 = vmpackc.low %vm589_vm0, %vm589_vm0 }
  0x99   : > { %887 = vmatpush.bf16.msra.mxu1 %v851_v45  ;;  %1257 = vmatpush.bf16.msra.mxu3 %v851_v45  ;;  %v850_v51 = vpack.c.b16 %v833_v47, %v832_v46  ;;  %vm2043_vm3 = vmpackc.low %vm590_vm1, %vm590_vm1  ;;  %vm605_vm4 = vcmp.eq.f32.partialorder %v1977_v4, 2.0  ;;  %vm606_vm5 = vcmp.eq.f32.partialorder %v1985_v6, 2.0  ;;  %v642_v55 = vmul.f32 %v1969_v0, %v1977_v4 }
  0x9a   : > { %v659_v56 = vpack.c.bf16 %v627_v49, %v627_v49  ;;  %v722_v57 = vsel %vm690_vm2, 1065369472, %v658_v50  ;;  %v643_v58 = vmul.f32 %v1969_v0, %v1985_v6  ;;  %vm2053_vm6 = vmpackc.low %vm605_vm4, %vm605_vm4  ;;  %vm587_vm7 = vcmp.eq.f32.partialorder %v1987_v7, 2.0 }
  0x9b   : > { %v814_v60 = vunpack.c.l.b16 %v722_v57  ;;  %v674_v61 = vpack.c.bf16 %v642_v55, %v642_v55  ;;  %vm2058_vm8 = vmpackc.low %vm606_vm5, %vm606_vm5  ;;  %vm588_vm9 = vcmp.eq.f32.partialorder %v1989_v8, 2.0  ;;  %v624_v1 = vmul.f32 %v1969_v0, %v1987_v7 }
  0x9c   : > { %869 = vmatpush.bf16.msra.mxu0 %v842_v48  ;;  %1250 = vmatpush.bf16.msra.mxu2 %v842_v48  ;;  %v723_v2 = vsel %vm2043_vm3, 1065369472, %v659_v56  ;;  %v675_v3 = vpack.c.bf16 %v643_v58, %v643_v58  ;;  %v625_v4 = vmul.f32 %v1969_v0, %v1989_v8  ;;  %vm2069_vm10 = vmpackc.low %vm587_vm7, %vm587_vm7  ;;  %v571_v6 = vunpack.c.l.bf16 %v539_v63 }
  0x9d   : > { %888 = vmatpush.bf16.msra.mxu1 %v850_v51  ;;  %1258 = vmatpush.bf16.msra.mxu3 %v850_v51  ;;  %v815_v7 = vunpack.c.l.b16 %v723_v2  ;;  %v738_v10 = vsel %vm2053_vm6, 1065369472, %v674_v61  ;;  %v656_v11 = vpack.c.bf16 %v624_v1, %v624_v1  ;;  %vm689_vm11 = vmpackc.low %vm588_vm9, %vm588_vm9  ;;  %v572_v8 = vunpack.c.l.bf16 %v540_v9 }
  0x9e   : > { %v739_v12 = vsel %vm2058_vm8, 1065369472, %v675_v3  ;;  %v830_v13 = vunpack.c.l.b16 %v738_v10  ;;  %v657_v14 = vpack.c.bf16 %v625_v4, %v625_v4  ;;  %vm603_vm12 = vcmp.eq.f32.partialorder %v571_v6, 2.0 }
  0x9f   : > { %v841_v63 = vpack.c.b16 %v815_v7, %v814_v60  ;;  %v831_v15 = vunpack.c.l.b16 %v739_v12  ;;  %v720_v16 = vsel %vm2069_vm10, 1065369472, %v656_v11  ;;  %vm604_vm13 = vcmp.eq.f32.partialorder %v572_v8, 2.0  ;;  %vm2091_vm14 = vmpackc.low %vm603_vm12, %vm603_vm12 }
  0xa0   : > { %v721_v18 = vsel %vm689_vm11, 1065369472, %v657_v14  ;;  %v812_v19 = vunpack.c.l.b16 %v720_v16  ;;  %v640_v54 = vmul.f32 %v1969_v0, %v571_v6  ;;  %v641_v9 = vmul.f32 %v1969_v0, %v572_v8  ;;  %vm705_vm15 = vmpackc.low %vm604_vm13, %vm604_vm13 }
  0xa1   : > { %870 = vmatpush.bf16.msra.mxu0 %v841_v63  ;;  %1251 = vmatpush.bf16.msra.mxu2 %v841_v63  ;;  %v849_v21 = vpack.c.b16 %v831_v15, %v830_v13  ;;  %v813_v22 = vunpack.c.l.b16 %v721_v18  ;;  %v457_v23 = vunpack.c.2.s8 %v444_v53  ;;  %v458_v24 = vunpack.c.3.s8 %v444_v53  ;;  %v2106_v13 = vld [vmem:[%s1899_s23] sm:$0xff] }
  0xa2   : > { %v672_v25 = vpack.c.bf16 %v640_v54, %v640_v54  ;;  %v673_v26 = vpack.c.bf16 %v641_v9, %v641_v9  ;;  %v473_v27 = vunpack.c.2.s8 %v2087_v17  ;;  %v474_v28 = vunpack.c.3.s8 %v2087_v17  ;;  %v2110_v15 = vld [vmem:[%s1899_s23 + $0x20] sm:$0xff]  ;;  %s2333_s23 = sld [smem:[#allocation21_spill]] }
  0xa3   : > { %889 = vmatpush.bf16.msra.mxu1 %v849_v21  ;;  %1259 = vmatpush.bf16.msra.mxu3 %v849_v21  ;;  %v840_v29 = vpack.c.b16 %v813_v22, %v812_v19  ;;  %v489_v30 = vcvt.s32.f32 %v457_v23  ;;  %v490_v31 = vcvt.s32.f32 %v458_v24  ;;  %v455_v32 = vunpack.c.0.s8 %v444_v53 }
  0xa4   : > { %v736_v33 = vsel %vm2091_vm14, 1065369472, %v672_v25  ;;  %v737_v34 = vsel %vm705_vm15, 1065369472, %v673_v26  ;;  %v505_v35 = vcvt.s32.f32 %v473_v27  ;;  %v506_v36 = vcvt.s32.f32 %v474_v28 }
  0xa5   : > { %871 = vmatpush.bf16.msra.mxu0 %v840_v29  ;;  %1252 = vmatpush.bf16.msra.mxu2 %v840_v29  ;;  %v828_v37 = vunpack.c.l.b16 %v736_v33  ;;  %v829_v39 = vunpack.c.l.b16 %v737_v34  ;;  %v521_v40 = vpack.c.bf16 %v489_v30, %v489_v30  ;;  %v522_v41 = vpack.c.bf16 %v490_v31, %v490_v31 }
  0xa6   : > { %v537_v42 = vpack.c.bf16 %v505_v35, %v505_v35  ;;  %v538_v38 = vpack.c.bf16 %v506_v36, %v506_v36  ;;  %v456_v43 = vunpack.c.1.s8 %v444_v53  ;;  %v487_v44 = vcvt.s32.f32 %v455_v32 }
  0xa7   : > { %v848_v45 = vpack.c.b16 %v829_v39, %v828_v37  ;;  %v553_v46 = vunpack.c.l.bf16 %v521_v40  ;;  %v554_v47 = vunpack.c.l.bf16 %v522_v41  ;;  %v471_v48 = vunpack.c.0.s8 %v2087_v17 }
  0xa8   : > { %v569_v49 = vunpack.c.l.bf16 %v537_v42  ;;  %v570_v50 = vunpack.c.l.bf16 %v538_v38  ;;  %v488_v51 = vcvt.s32.f32 %v456_v43  ;;  %v519_v52 = vpack.c.bf16 %v487_v44, %v487_v44  ;;  %p1229_p10 = scmp.ne.s32.totalorder %s2333_s23, 1 }
  0xa9   : > { %890 = vmatpush.bf16.msra.mxu1 %v848_v45  ;;  %1260 = vmatpush.bf16.msra.mxu3 %v848_v45  ;;  %vm585_vm0 = vcmp.eq.f32.partialorder %v553_v46, 2.0  ;;  %vm586_vm1 = vcmp.eq.f32.partialorder %v554_v47, 2.0  ;;  %v622_v55 = vmul.f32 %v1969_v0, %v553_v46  ;;  %v623_v56 = vmul.f32 %v1969_v0, %v554_v47  ;;  %s2334_s26 = sld [smem:[#allocation34_spill]] (!%p1229_p10) }
  0xaa   : > { %vm686_vm2 = vmpackc.low %vm585_vm0, %vm585_vm0  ;;  %vm601_vm3 = vcmp.eq.f32.partialorder %v569_v49, 2.0  ;;  %vm602_vm4 = vcmp.eq.f32.partialorder %v570_v50, 2.0  ;;  %v638_v57 = vmul.f32 %v1969_v0, %v569_v49  ;;  %v639_v58 = vmul.f32 %v1969_v0, %v570_v50 }
  0xab   : > { %v654_v59 = vpack.c.bf16 %v622_v55, %v622_v55  ;;  %v655_v60 = vpack.c.bf16 %v623_v56, %v623_v56  ;;  %vm687_vm5 = vmpackc.low %vm586_vm1, %vm586_vm1  ;;  %v520_v61 = vpack.c.bf16 %v488_v51, %v488_v51  ;;  %v551_v62 = vunpack.c.l.bf16 %v519_v52 }
  0xac   : > { %v670_v1 = vpack.c.bf16 %v638_v57, %v638_v57  ;;  %v671_v2 = vpack.c.bf16 %v639_v58, %v639_v58  ;;  %vm702_vm6 = vmpackc.low %vm601_vm3, %vm601_vm3  ;;  %v472_v3 = vunpack.c.1.s8 %v2087_v17  ;;  %v503_v4 = vcvt.s32.f32 %v471_v48 }
  0xad   : > { %v718_v5 = vsel %vm686_vm2, 1065369472, %v654_v59  ;;  %v719_v6 = vsel %vm687_vm5, 1065369472, %v655_v60  ;;  %vm703_vm7 = vmpackc.low %vm602_vm4, %vm602_vm4  ;;  %v552_v7 = vunpack.c.l.bf16 %v520_v61  ;;  %vm583_vm8 = vcmp.eq.f32.partialorder %v551_v62, 2.0 }
  0xae   : > { %v810_v10 = vunpack.c.l.b16 %v718_v5  ;;  %v811_v11 = vunpack.c.l.b16 %v719_v6  ;;  %v734_v8 = vsel %vm702_vm6, 1065369472, %v670_v1  ;;  %v735_v12 = vsel %vm703_vm7, 1065369472, %v671_v2  ;;  %vm2113_vm10 = vmpackc.low %vm583_vm8, %vm583_vm8 }
  0xaf   : > { %v826_v14 = vunpack.c.l.b16 %v734_v8  ;;  %v827_v53 = vunpack.c.l.b16 %v735_v12  ;;  %vm584_vm9 = vcmp.eq.f32.partialorder %v552_v7, 2.0  ;;  %v620_v63 = vmul.f32 %v1969_v0, %v551_v62  ;;  %s2335_s25 = smov (!%p1229_p10), %s2334_s26 }
  0xb0   : > { %v839_v16 = vpack.c.b16 %v811_v11, %v810_v10  ;;  %v621_v17 = vmul.f32 %v1969_v0, %v552_v7  ;;  %v504_v19 = vcvt.s32.f32 %v472_v3  ;;  %v535_v54 = vpack.c.bf16 %v503_v4, %v503_v4  ;;  %vm685_vm11 = vmpackc.low %vm584_vm9, %vm584_vm9 }
  0xb1   : > { %v847_v9 = vpack.c.b16 %v827_v53, %v826_v14  ;;  %v652_v20 = vpack.c.bf16 %v620_v63, %v620_v63  ;;  %v453_v21 = vunpack.c.2.s8 %v2106_v13  ;;  %v454_v22 = vunpack.c.3.s8 %v2106_v13 }
  0xb2   : > { %872 = vmatpush.bf16.msra.mxu0 %v839_v16  ;;  %1253 = vmatpush.bf16.msra.mxu2 %v839_v16  ;;  %v653_v23 = vpack.c.bf16 %v621_v17, %v621_v17  ;;  %v536_v24 = vpack.c.bf16 %v504_v19, %v504_v19  ;;  %v567_v25 = vunpack.c.l.bf16 %v535_v54  ;;  %v469_v26 = vunpack.c.2.s8 %v2110_v15 }
  0xb3   : > { %891 = vmatpush.bf16.msra.mxu1 %v847_v9  ;;  %1261 = vmatpush.bf16.msra.mxu3 %v847_v9  ;;  %v716_v27 = vsel %vm2113_vm10, 1065369472, %v652_v20  ;;  %v485_v28 = vcvt.s32.f32 %v453_v21  ;;  %v486_v29 = vcvt.s32.f32 %v454_v22  ;;  %v470_v30 = vunpack.c.3.s8 %v2110_v15 }
  0xb4   : > { %v717_v31 = vsel %vm685_vm11, 1065369472, %v653_v23  ;;  %v808_v32 = vunpack.c.l.b16 %v716_v27  ;;  %v568_v33 = vunpack.c.l.bf16 %v536_v24  ;;  %vm599_vm12 = vcmp.eq.f32.partialorder %v567_v25, 2.0 }
  0xb5   : > { %v809_v34 = vunpack.c.l.b16 %v717_v31  ;;  %v636_v35 = vmul.f32 %v1969_v0, %v567_v25  ;;  %v517_v36 = vpack.c.bf16 %v485_v28, %v485_v28  ;;  %v518_v37 = vpack.c.bf16 %v486_v29, %v486_v29  ;;  %vm700_vm14 = vmpackc.low %vm599_vm12, %vm599_vm12  ;;  %v1215_v31 = vld [vmem:[%s1907_s12] sm:$0xf] }
  0xb6   : > { %vm600_vm13 = vcmp.eq.f32.partialorder %v568_v33, 2.0  ;;  %v637_v39 = vmul.f32 %v1969_v0, %v568_v33  ;;  %v501_v40 = vcvt.s32.f32 %v469_v26  ;;  %v502_v41 = vcvt.s32.f32 %v470_v30 }
  0xb7   : > { %v838_v42 = vpack.c.b16 %v809_v34, %v808_v32  ;;  %v668_v38 = vpack.c.bf16 %v636_v35, %v636_v35  ;;  %vm701_vm15 = vmpackc.low %vm600_vm13, %vm600_vm13  ;;  %v549_v43 = vunpack.c.l.bf16 %v517_v36  ;;  %v550_v44 = vunpack.c.l.bf16 %v518_v37  ;;  %v1246_v35 = vld [vmem:[%s1907_s12 + $0x4] sm:$0xf0] }
  0xb8   : > { %v669_v45 = vpack.c.bf16 %v637_v39, %v637_v39  ;;  %v533_v46 = vpack.c.bf16 %v501_v40, %v501_v40  ;;  %v534_v47 = vpack.c.bf16 %v502_v41, %v502_v41  ;;  %v451_v48 = vunpack.c.0.s8 %v2106_v13  ;;  %v1223_v39 = vld [vmem:[%s1907_s12 + $0x10] sm:$0xf]  ;;  %v1248_v40 = vld [vmem:[%s1907_s12 + $0x14] sm:$0xf0] }
  0xb9   : > { %873 = vmatpush.bf16.msra.mxu0 %v838_v42  ;;  %1254 = vmatpush.bf16.msra.mxu2 %v838_v42  ;;  %v732_v49 = vsel %vm700_vm14, 1065369472, %v668_v38  ;;  %vm581_vm0 = vcmp.eq.f32.partialorder %v549_v43, 2.0  ;;  %vm582_vm1 = vcmp.eq.f32.partialorder %v550_v44, 2.0  ;;  %v618_v50 = vmul.f32 %v1969_v0, %v549_v43 }
  0xba   : > { %v733_v51 = vsel %vm701_vm15, 1065369472, %v669_v45  ;;  %v824_v52 = vunpack.c.l.b16 %v732_v49  ;;  %v619_v55 = vmul.f32 %v1969_v0, %v550_v44  ;;  %vm682_vm2 = vmpackc.low %vm581_vm0, %vm581_vm0  ;;  %v565_v56 = vunpack.c.l.bf16 %v533_v46 }
  0xbb   : > { %v825_v57 = vunpack.c.l.b16 %v733_v51  ;;  %v650_v58 = vpack.c.bf16 %v618_v50, %v618_v50  ;;  %vm683_vm3 = vmpackc.low %vm582_vm1, %vm582_vm1  ;;  %v566_v59 = vunpack.c.l.bf16 %v534_v47  ;;  %v452_v60 = vunpack.c.1.s8 %v2106_v13  ;;  %v1247_v50 = vld [vmem:[%s1907_s12 + $0x14] sm:$0xf]  ;;  %v1225_v51 = vld [vmem:[%s1907_s12 + $0x18] sm:$0xf0] }
  0xbc   : > { %v651_v61 = vpack.c.bf16 %v619_v55, %v619_v55  ;;  %vm597_vm4 = vcmp.eq.f32.partialorder %v565_v56, 2.0  ;;  %v634_v62 = vmul.f32 %v1969_v0, %v565_v56  ;;  %v483_v1 = vcvt.s32.f32 %v451_v48  ;;  %v1245_v48 = vld [vmem:[%s1907_s12 + $0x4] sm:$0xf] }
  0xbd   : > { %v846_v2 = vpack.c.b16 %v825_v57, %v824_v52  ;;  %v714_v3 = vsel %vm682_vm2, 1065369472, %v650_v58  ;;  %vm598_vm5 = vcmp.eq.f32.partialorder %v566_v59, 2.0  ;;  %v635_v4 = vmul.f32 %v1969_v0, %v566_v59  ;;  %vm698_vm6 = vmpackc.low %vm597_vm4, %vm597_vm4  ;;  %v744_v58 = vld [vmem:[#allocation2 + $0x10] sm:$0xff] }
  0xbe   : > { %v715_v5 = vsel %vm683_vm3, 1065369472, %v651_v61  ;;  %v806_v6 = vunpack.c.l.b16 %v714_v3  ;;  %v666_v7 = vpack.c.bf16 %v634_v62, %v634_v62  ;;  %vm699_vm7 = vmpackc.low %vm598_vm5, %vm598_vm5  ;;  %v484_v10 = vcvt.s32.f32 %v452_v60 }
  0xbf   : > { %892 = vmatpush.bf16.msra.mxu1 %v846_v2  ;;  %1262 = vmatpush.bf16.msra.mxu3 %v846_v2  ;;  %v807_v11 = vunpack.c.l.b16 %v715_v5  ;;  %v667_v8 = vpack.c.bf16 %v635_v4, %v635_v4  ;;  %v515_v12 = vpack.c.bf16 %v483_v1, %v483_v1  ;;  %v467_v13 = vunpack.c.0.s8 %v2110_v15  ;;  %v746_v1 = vld [vmem:[#allocation2 + $0x18] sm:$0xff]  ;;  %v745_v5 = vld [vmem:[#allocation2] sm:$0xff] }
  0xc0   : > { %v730_v14 = vsel %vm698_vm6, 1065369472, %v666_v7  ;;  %v516_v53 = vpack.c.bf16 %v484_v10, %v484_v10  ;;  %v468_v63 = vunpack.c.1.s8 %v2110_v15  ;;  %v1216_v44 = vor.u32 %v1246_v35, %v1215_v31 }
  0xc1   : > { %v837_v16 = vpack.c.b16 %v807_v11, %v806_v6  ;;  %v731_v17 = vsel %vm699_vm7, 1065369472, %v667_v8  ;;  %v822_v18 = vunpack.c.l.b16 %v730_v14  ;;  %v547_v19 = vunpack.c.l.bf16 %v515_v12  ;;  %v747_v12 = vld [vmem:[#allocation2 + $0x8] sm:$0xff] }
  0xc2   : > { %v823_v54 = vunpack.c.l.b16 %v731_v17  ;;  %v548_v9 = vunpack.c.l.bf16 %v516_v53  ;;  %v499_v20 = vcvt.s32.f32 %v467_v13  ;;  %v500_v21 = vcvt.s32.f32 %v468_v63 }
  0xc3   : > { %874 = vmatpush.bf16.msra.mxu0 %v837_v16  ;;  %1255 = vmatpush.bf16.msra.mxu2 %v837_v16  ;;  %vm579_vm8 = vcmp.eq.f32.partialorder %v547_v19, 2.0  ;;  %v616_v22 = vmul.f32 %v1969_v0, %v547_v19  ;;  %v1224_v45 = vor.u32 %v1248_v40, %v1223_v39  ;;  %v1228_v56 = vor.u32 %v1247_v50, %v1225_v51 }
  0xc4   : > { %v845_v23 = vpack.c.b16 %v823_v54, %v822_v18  ;;  %vm580_vm9 = vcmp.eq.f32.partialorder %v548_v9, 2.0  ;;  %v617_v24 = vmul.f32 %v1969_v0, %v548_v9  ;;  %vm680_vm10 = vmpackc.low %vm579_vm8, %vm579_vm8  ;;  %v531_v15 = vpack.c.bf16 %v499_v20, %v499_v20 }
  0xc5   : > { %v648_v25 = vpack.c.bf16 %v616_v22, %v616_v22  ;;  %vm681_vm11 = vmpackc.low %vm580_vm9, %vm580_vm9  ;;  %v532_v26 = vpack.c.bf16 %v500_v21, %v500_v21 }
  0xc6   : > { %893 = vmatpush.bf16.msra.mxu1 %v845_v23  ;;  %1263 = vmatpush.bf16.msra.mxu3 %v845_v23  ;;  %v649_v27 = vpack.c.bf16 %v617_v24, %v617_v24  ;;  %v563_v28 = vunpack.c.l.bf16 %v531_v15 }
  0xc7   : > { %v712_v29 = vsel %vm680_vm10, 1065369472, %v648_v25  ;;  %v564_v30 = vunpack.c.l.bf16 %v532_v26 }
  0xc8   : > { %v713_v32 = vsel %vm681_vm11, 1065369472, %v649_v27  ;;  %v804_v33 = vunpack.c.l.b16 %v712_v29  ;;  %vm595_vm12 = vcmp.eq.f32.partialorder %v563_v28, 2.0  ;;  %v632_v34 = vmul.f32 %v1969_v0, %v563_v28 }
  0xc9   : > { %v805_v36 = vunpack.c.l.b16 %v713_v32  ;;  %vm596_vm13 = vcmp.eq.f32.partialorder %v564_v30, 2.0  ;;  %v633_v37 = vmul.f32 %v1969_v0, %v564_v30  ;;  %vm696_vm14 = vmpackc.low %vm595_vm12, %vm595_vm12  ;;  %v1217_v0 = vld [vmem:[%s1907_s12 + $0x8] sm:$0xf0] }
  0xca   : > { %v664_v41 = vpack.c.bf16 %v632_v34, %v632_v34  ;;  %vm697_vm15 = vmpackc.low %vm596_vm13, %vm596_vm13  ;;  %v1220_v55 = vor.u32 %v1245_v48, %v1217_v0 }
  0xcb   : > { %v836_v42 = vpack.c.b16 %v805_v36, %v804_v33  ;;  %v665_v38 = vpack.c.bf16 %v633_v37, %v633_v37 }
  0xcc   : > { %v728_v43 = vsel %vm696_vm14, 1065369472, %v664_v41 }
  0xcd   : > { %875 = vmatpush.bf16.msra.mxu0 %v836_v42  ;;  %1256 = vmatpush.bf16.msra.mxu2 %v836_v42  ;;  %v729_v46 = vsel %vm697_vm15, 1065369472, %v665_v38  ;;  %v820_v47 = vunpack.c.l.b16 %v728_v43 }
  0xce   : > { %v821_v49 = vunpack.c.l.b16 %v729_v46 }
  0xd0   : > { %v844_v52 = vpack.c.b16 %v821_v49, %v820_v47  ;;  %876 = vmatmul.bf16.vlgmr.msra.gmra.mxu0 %v1216_v44  ;;  %881 = vmatmul.bf16.vlgmr.msra.gmra.mxu2 %v1224_v45 }
  0xd2   : > { %894 = vmatpush.bf16.msra.mxu1 %v844_v52  ;;  %1264 = vmatpush.bf16.msra.mxu3 %v844_v52 }
  0xd5   : > { %895 = vmatmul.bf16.vlgmr.msra.gmra.mxu1 %v1220_v55  ;;  %900 = vmatmul.bf16.vlgmr.msra.gmra.mxu3 %v1228_v56 }
 0x14d   : > { %v877_v57 = vpop.f32.mrf.mxu0 }
 0x152   : > { %v896_v59 = vpop.f32.mrf.mxu1 }
 0x153   : > { %v897_v60 = vadd.f32 %v896_v59, %v877_v57  ;;  %v882_v61 = vpop.f32.mrf.mxu2 }
 0x155   : > { %v906_v62 = vadd.f32 %v897_v60, %v744_v58  ;;  %v879_v3 = vpop.f32.mrf.mxu0 }
 0x157   : > { %910 = vst [vmem:[#allocation2 + $0x10] sm:$0xff] %v906_v62 }
 0x158   : > { %v901_v2 = vpop.f32.mrf.mxu3 }
 0x159   : > { %v902_v4 = vadd.f32 %v901_v2, %v882_v61 }
 0x15a   : > { %v898_v6 = vpop.f32.mrf.mxu1 }
 0x15b   : > { %v908_v7 = vadd.f32 %v902_v4, %v746_v1  ;;  %v899_v10 = vadd.f32 %v898_v6, %v879_v3  ;;  %v884_v8 = vpop.f32.mrf.mxu2 }
 0x15d   : > { %912 = vst [vmem:[#allocation2 + $0x18] sm:$0xff] %v908_v7  ;;  %v907_v11 = vadd.f32 %v899_v10, %v745_v5 }
 0x15f   : > { %911 = vst [vmem:[#allocation2] sm:$0xff] %v907_v11 }
 0x160   : > { %v903_v13 = vpop.f32.mrf.mxu3 }
 0x161   : > { %v904_v14 = vadd.f32 %v903_v13, %v884_v8  ;;  %917 = sbr.rel (%p1229_p10) target bundleno = 517 (0x205), region = 102 }
 0x163   : > { %v909_v53 = vadd.f32 %v904_v14, %v747_v12 }
 0x165   : > { %913 = vst [vmem:[#allocation2 + $0x8] sm:$0xff] %v909_v53 }
 0x166   : > { %v935_v63 = vld [vmem:[%s1917_s22 + $0x8] sm:$0x3]  ;;  %vm995_vm0 = vcmask 1041408   ;;  %v934_v16 = vld [vmem:[%s1917_s22] sm:$0xff]  ;;  %vm982_vm1 = vcmask 80896   ;;  %vm940_vm2 = vcmask 261120  }
 0x167   : > { %v931_v17 = vld [vmem:[%s2334_s26 + $0x8] sm:$0xff]  ;;  %1269 = vmatpush.msk.msra.mxu3 %vm995_vm0, %v935_v63  ;;  %v1414_v19 = vld [vmem:[%s422_s5] ss:$0 sm:$0xff]  ;;  %1234 = vmatpush.msk.msra.mxu1 %vm995_vm0, %v935_v63  ;;  %v920_v54 = vld [vmem:[#allocation2 + $0x18] sm:$0xff] }
 0x168   : > { %v919_v9 = vld [vmem:[#allocation2] sm:$0xff]  ;;  %v928_v21 = vmul.f32 %v1414_v19, %v920_v54  ;;  %v918_v22 = vld [vmem:[#allocation2 + $0x10] sm:$0xff]  ;;  %v937_v28 = vld [vmem:[#allocation11 + $0x8] sm:$0xff] }
 0x169   : > { %1270 = vmatpush.msra.mxu3 %v934_v16  ;;  %1014 = vmatpush.msra.mxu1 %v934_v16  ;;  %v930_v23 = vld [vmem:[%s2335_s25] sm:$0xff]  ;;  %v927_v24 = vmul.f32 %v1414_v19, %v919_v9  ;;  %v926_v15 = vmul.f32 %v1414_v19, %v918_v22  ;;  %v938_v26 = vld [vmem:[#allocation11 + $0x10] sm:$0xff]  ;;  %v939_v29 = vld [vmem:[#allocation11 + $0x18] sm:$0xff] }
 0x16a   : > { %1236 = vmatmul.msk.f32.vlgmr.msra.gmra.mxu3 %vm982_vm1, %v931_v17  ;;  %1235 = vmatmul.msk.f32.vlgmr.msra.gmra.mxu1 %vm982_vm1, %v930_v23  ;;  %v936_v25 = vld [vmem:[#allocation11] sm:$0xff]  ;;  %v932_v27 = vld [vmem:[%s2335_s25 + $0x10] sm:$0xff]  ;;  %v933_v30 = vld [vmem:[%s2335_s25 + $0x18] sm:$0xff] }
 0x16c   : > { %v921_v18 = vld [vmem:[#allocation2 + $0x8] sm:$0xff] }
 0x16d   : > { %v929_v20 = vmul.f32 %v1414_v19, %v921_v18 }
 0x16f   : > { %965 = vmatpush.msra.mxu0 %v929_v20  ;;  %1265 = vmatpush.msra.mxu2 %v929_v20 }
 0x171   : > { %966 = vmatpush.msra.mxu0 %v928_v21  ;;  %1266 = vmatpush.msra.mxu2 %v928_v21 }
 0x172   : > { %1237 = vmatmul.msk.f32.gmra.mxu3 %vm982_vm1, %v932_v27 }
 0x173   : > { %967 = vmatpush.msra.mxu0 %v927_v24  ;;  %1267 = vmatpush.msra.mxu2 %v927_v24 }
 0x175   : > { %968 = vmatpush.msra.mxu0 %v926_v15  ;;  %1268 = vmatpush.msra.mxu2 %v926_v15 }
 0x176   : > { %1230 = vmatmul.msk.f32.vlgmr.msra.gmra.mxu0 %vm940_vm2, %v936_v25  ;;  %1232 = vmatmul.msk.f32.vlgmr.msra.gmra.mxu2 %vm940_vm2, %v938_v26 }
 0x17a   : > { %1238 = vmatmul.msk.f32.gmra.mxu3 %vm982_vm1, %v933_v30 }
 0x17e   : > { %1231 = vmatmul.msk.f32.gmra.mxu0 %vm940_vm2, %v937_v28  ;;  %1233 = vmatmul.msk.f32.gmra.mxu2 %vm940_vm2, %v939_v29 }
 0x1e7   : > { %v1016_v32 = vpop.f32.mrf.mxu1 }
 0x1ed   : > { %v1019_v31 = vpop.f32.mrf.mxu3 }
 0x1f3   : > { %v970_v33 = vpop.f32.mrf.mxu0 }
 0x1f4   : > { %v1017_v34 = vadd.f32 %v1016_v32, %v970_v33 }
 0x1f5   : > { %v1022_v36 = vpop.f32.mrf.mxu3 }
 0x1f6   : > { %1028 = vst [vmem:[%s1932_s30] sm:$0xff] %v1017_v34 }
 0x1f9   : > { %v976_v35 = vpop.f32.mrf.mxu2 }
 0x1fa   : > { %v1023_v37 = vadd.f32 %v1022_v36, %v976_v35 }
 0x1fb   : > { %v973_v39 = vpop.f32.mrf.mxu0 }
 0x1fc   : > { %v1020_v40 = vadd.f32 %v1019_v31, %v973_v39  ;;  %1030 = vst [vmem:[%s1932_s30 + $0x10] sm:$0xff] %v1023_v37 }
 0x1fd   : > { %v1025_v42 = vpop.f32.mrf.mxu3 }
 0x1fe   : > { %1029 = vst [vmem:[%s1932_s30 + $0x8] sm:$0xff] %v1020_v40 }
 0x201   : > { %v979_v41 = vpop.f32.mrf.mxu2 }
 0x202   : > { %v1026_v38 = vadd.f32 %v1025_v42, %v979_v41 }
 0x204   : > { %1031 = vst [vmem:[%s1932_s30 + $0x18] sm:$0xff] %v1026_v38 }
 0x205 PF: > { %s2337_s24 = sld [smem:[#allocation22_spill]]  ;;  %s1044_s12 = sshll.u32 %s1932_s30, 4  ;;  %s1045_s12 = int_to_ptr.vmem [resolvable:$true] %s1044_s12 }
 0x206   : > { %s2339_s20 = sld [smem:[#allocation36_spill]]  ;;  %s1033_s26 = scalar_lea.sflag [#allocation7], %s1914_s7 }
 0x20b   : > { %s1240_s11 = sshll.u32 %s2337_s24, 3 }
 0x20c   : > { %s1043_s23 = scalar_lea.hbm %s2339_s20, %s1240_s11  ;;  %s1521_s17 = scalar_lea.hbm %s2339_s20, 64 }
 0x20d   : > { %s1046_s3 = sshll.u32 %s1043_s23, 4  ;;  %s1047_s3 = int_to_ptr.hbm [resolvable:$true] %s1046_s3 }
 0x20e   : > { %s1515_s21 = sshra.s32 %s1047_s3, 4  ;;  %s1516_s21 = int_to_ptr.hbm [resolvable:$true] %s1515_s21 }
 0x20f   : > { %s1517_s16 = scalar_lea.hbm %s1516_s21, 32  ;;  %p1522_p5 = scmp.lt.s32.totalorder %s1516_s21, %s2339_s20 }
 0x210   : > { %p1518_p0 = scmp.ne.s32.totalorder %s1516_s21, %s1517_s16  ;;  %p1523_p7 = scmp.lt.s32.totalorder %s1521_s17, %s1517_s16 }
 0x212   : > { %p1519_p2 = pnand %p1518_p0, %p1851_p11  ;;  %p1524_p9 = por %p1523_p7, %p1522_p5 }
 0x214   : > { %p1520_p1 = pneg %p1519_p2 }
 0x216   : > { %p1525_p3 = pnand %p1524_p9, %p1520_p1 }
 0x218   : > { %1528 = shalt.err (!%p1525_p3)
}
 0x219   : > { %s1664_s7 = smov 128   ;;  %s1665_s30 = smov 256  }
 0x21a   : > { %s1666_s9 = smov 8  }
 0x21b   : > { %1279 = dma.vmem_to_hbm [thread:$0]  (%p1851_p11), %s1045_s12, 512, %s1047_s3, %s1033_s26, %s1664_s7, %s1665_s30, %s1666_s9  }
 0x21c PF: > { %s2340_s29 = sld [smem:[#allocation17_spill]]  ;;  %p1291_p8 = scmp.ge.s32.totalorder %s1655_s15, 2 }
 0x21e   : > { %p1286_p12 = pnand %p1291_p8, %p1856_p6 }
 0x220   : > { %p1287_p13 = pneg %p1286_p12 }
 0x222   : > { %s1061_s11 = sand.u32 1, %s2340_s29  }
 0x223   : > { %s1062_s27 = scalar_lea.sflag [#allocation7], %s1061_s11 }
 0x224   : > { %1598 = dma.done.wait (%p1287_p13), %s1062_s27, 512  }
 0x225   : > { %1600 = vsyncadd (%p1287_p13), %s1062_s27, 4294966784  ;;  %s27_s15 = sadd.s32 1, %s1655_s15   ;;  %s2343_s26 = sld [smem:[#allocation18_spill]] }
 0x226   : > { %p2194_p4 = scmp.ge.s32.totalorder %s27_s15, 6   ;;  %s2344_s6 = sld [smem:[#allocation30_spill]] }
 0x227   : > { %s2345_s29 = sld [smem:[#allocation19_spill]]  ;;  %s2351_s27 = smov %s1611_s28 }
 0x228   : > { %s2346_s23 = sld [smem:[#allocation27_spill]]  ;;  %s2353_s30 = smov %s1623_s8 }
 0x229   : > { %s2347_s12 = sld [smem:[#allocation20_spill]]  ;;  %s2355_s9 = smov %s1631_s0 }
 0x22a   : > { %s2348_s10 = sld [smem:[#allocation28_spill]]  ;;  %s2357_s11 = smov %s1647_s13 }
 0x22b   : > { %s2349_s3 = sld [smem:[#allocation24_spill]] }
 0x22c   : > { %s2350_s21 = sld [smem:[#allocation25_spill]]  ;;  %s2352_s28 = smov %s2344_s6 }
 0x22e   : > { %s2354_s8 = smov %s2346_s23  ;;  %26 = sbr.rel (!%p2194_p4) target bundleno = 18 (0x12), region = 163 }
 0x22f   : > { %s2356_s0 = smov %s2347_s12  ;;  %s2358_s12 = smov %s1651_s14 }
 0x231   : > { %s2359_s13 = smov %s2349_s3 }
 0x232   : > { %s2360_s14 = smov %s2350_s21 }
 0x233   :  { %1068 = vsyncpa [#allocation6], 1 }
 0x234   :  { %1070 = vsyncpa [#allocation6 + $0x1], 1 }
 0x235   :  { %1071 = vsyncpa [#allocation9], 1 }
 0x236   :  { %1073 = vsyncpa [#allocation9 + $0x1], 1 }
 0x237   :  { %1074 = vsyncpa [#allocation7], 1 }
 0x238   :  { %1076 = vsyncpa [#allocation7 + $0x1], 1 }

</bundles_post_ra>
